<compile_context>
chip_gen: v7x
topology: tpu7x:2x2x1
jax: 0.10.0
libtpu: 0.0.40
codegen_flags: <defaults>
</compile_context>

<pallas_src>
import functools

import jax
import jax.numpy as jnp
import numpy as np
from jax.experimental import pallas as pl
from jax.experimental.pallas import tpu as pltpu

# ---- ScoreMatchingSDE defaults -------------------------------------------------
T0, T1 = 0.0, 1.0
BETA_MIN, BETA_MAX = 0.1, 50.0
WHITE_NOISE_DT = 0.01


# ---- synthetic stand-ins for unspecified sub-modules ---------------------------
# TODO(synk): the fractional white-noise process (inducing points / precompute) is
# not provided; modeled as a deterministic (mean_dt, var_sqrt) with the same shapes.
# NOTE: if the real process returns per-batch/per-pixel var_sqrt, `coef` below must
# become a vector and the (1+B,) scalar packing extended accordingly.
def white_noise(tn, batch):
    b_idx = jnp.arange(batch, dtype=jnp.float32)
    mean_dt = (0.001 * (b_idx + 1.0) * jnp.cos(tn))[:, None]        # (B, 1)
    var_sqrt = (0.7 + 0.2 * jnp.sin(tn)) * jnp.ones((1, 1), jnp.float32)  # (1, 1)
    return mean_dt, var_sqrt


# TODO(synk): the denoiser architecture is not specified in the module; implemented
# as a pointwise (1x1-conv) score MLP with a sinusoidal time embedding.
def time_embedding(tn, params):
    hidden = params["W1"].shape[1]
    half = hidden // 2
    freqs = jnp.exp(-jnp.log(10000.0) * jnp.arange(half, dtype=jnp.float32) / half)
    ang = tn * freqs
    emb = jnp.concatenate([jnp.sin(ang), jnp.cos(ang)])              # (hidden,)
    te = emb @ params["Wt"] + params["bt"]                           # (hidden,)
    return te * jax.nn.sigmoid(te)                                   # SiLU


# ---- per-generation knobs -------------------------------------------------------
@functools.lru_cache(maxsize=1)
def _chip_config():
    """bf16 SiLU + larger tiles on v6e/v7x; f32 SiLU + tile_n<=512 on v5e and older."""
    kind = jax.devices()[0].device_kind.lower()
    legacy = any(v in kind for v in ("v2", "v3", "v4", "v5"))
    compute_dtype = jnp.float32 if legacy else jnp.bfloat16
    if legacy:
        max_tile = 512                          # v5e: 1 vst slot, no bf16 VPU/EUP
    else:
        max_tile = 2048 if compute_dtype == jnp.bfloat16 else 1024
    is_v7 = "v7" in kind
    return compute_dtype, max_tile, is_v7


def _pick_pixel_tile(n, max_tile):
    """Largest lane-dense (multiple-of-128) tile <= max_tile dividing n."""
    if n <= max_tile:
        return n                                # full row: block == array dim, legal
    t = (max_tile // 128) * 128
    while t >= 128:
        if n % t == 0:
            return t
        t -= 128
    # TODO(synk): no 128-multiple divisor of N — pad H*W to a multiple of 128 upstream
    # for production shapes; the full-row fallback is legal but vreg/VMEM heavy.
    return n


# ---- Pallas kernel (hot path) --------------------------------------------------
def _make_kernel(compute_dtype):
    def _reverse_drift_kernel(scal_ref, x_ref, w1t_ref, bias1_ref, w2t_ref, b2_ref, o_ref):
        b = pl.program_id(0)                    # batch axis MUST be grid dim 0 (shift indexing)
        x = x_ref[...]                          # (C, TILE_N) f32, lane-dense

        # denoiser: pointwise score net (1x1 convs == channel matmuls).
        # Both matmuls stay on the MXU (it is ~idle; VPU/EUP are the binding slots).
        h = jnp.dot(w1t_ref[...], x, preferred_element_type=jnp.float32)  # (hidden, TILE_N)

        # SiLU on the 8x-expanded intermediate, in compute_dtype (bf16 on v6e/v7x):
        #   silu(h) = h / (1 + exp(-h)); exp on EUP, approx reciprocal on EUP (f32-only op).
        hb = h.astype(compute_dtype) + bias1_ref[...]                 # bias1 = b1 + temb
        e = jnp.exp(-hb)                                              # EUP
        sig = pl.reciprocal(1.0 + e.astype(jnp.float32), approx=True)  # EUP vrcp
        h_act = hb * sig.astype(compute_dtype)                        # (hidden, TILE_N)

        # second matmul: W2^T and b2 are pre-scaled by coef in the wrapper -> coef*score.
        score_s = (jnp.dot(w2t_ref[...], h_act, preferred_element_type=jnp.float32)
                   + b2_ref[...])                                     # (C, TILE_N) f32

        coef = scal_ref[0]        # 0.5 * beta(-t) * var_sqrt**2           (scalar)
        shift = scal_ref[1 + b]   # -sqrt(beta(-t)) * mean_dt[b] / dt      (per batch)

        # -(f_mod - 0.5 * g_mod**2 * score)  ==  coef*score + coef*x + shift
        o_ref[...] = score_s + coef * x + shift

    return _reverse_drift_kernel


def reverse_diffeq_forward(t, y_nchw, params):
    """ReverseDiffeqWrapper.forward(t, y) with y in NCHW (PyTorch convention)."""
    B, C, H, W = y_nchw.shape
    N = H * W
    hidden = params["W1"].shape[1]
    compute_dtype, max_tile, is_v7 = _chip_config()

    tn = -t
    beta = BETA_MIN + tn * (BETA_MAX - BETA_MIN)
    sqrt_beta = jnp.sqrt(beta)
    mean_dt, var_sqrt = white_noise(tn, B)
    var_sqrt = jnp.maximum(var_sqrt, 1e-5)
    vs = var_sqrt[0, 0]

    coef = 0.5 * beta * vs * vs                                      # scalar
    shift = -sqrt_beta * mean_dt[:, 0] / WHITE_NOISE_DT              # (B,)
    scalars = jnp.concatenate([coef[None], shift]).astype(jnp.float32)  # (1+B,) -> SMEM

    # fold b1 + time embedding into one bias; fold coef into the second matmul;
    # transpose weights for the (C, N) channels-on-sublane layout.
    temb = time_embedding(tn, params)
    bias1 = (params["b1"] + temb).astype(compute_dtype)[:, None]     # (hidden, 1)
    w1t = params["W1"].T.astype(jnp.float32)                         # (hidden, C)
    w2t = (coef * params["W2"].T).astype(compute_dtype)              # (C, hidden), pre-scaled
    b2c = (coef * params["b2"]).astype(jnp.float32)[:, None]         # (C, 1),      pre-scaled

    # NCHW kept: (B, C, H, W) -> (B, C, H*W) is a free view; pixels on lanes.
    # I/O stays f32 (solver-facing); cast to bf16 here only if the solver tolerates it.
    x = y_nchw.reshape(B, C, N).astype(jnp.float32)

    tile_n = _pick_pixel_tile(N, max_tile)
    n_tiles = N // tile_n
    # v7x: 2 TensorCores — keep the parallel grid even so neither core idles.
    if is_v7 and (B * n_tiles) % 2 == 1 and tile_n % 256 == 0:
        tile_n //= 2
        n_tiles = N // tile_n

    grid_spec = pltpu.PrefetchScalarGridSpec(
        num_scalar_prefetch=1,
        grid=(B, n_tiles),                                            # batch first (shift indexing)
        in_specs=[
            pl.BlockSpec((None, C, tile_n), lambda b, n, s: (b, 0, n)),   # x tile
            pl.BlockSpec((hidden, C), lambda b, n, s: (0, 0)),            # W1^T
            pl.BlockSpec((hidden, 1), lambda b, n, s: (0, 0)),            # b1 + temb
            pl.BlockSpec((C, hidden), lambda b, n, s: (0, 0)),            # coef * W2^T
            pl.BlockSpec((C, 1), lambda b, n, s: (0, 0)),                 # coef * b2
        ],
        out_specs=pl.BlockSpec((None, C, tile_n), lambda b, n, s: (b, 0, n)),
    )

    cost = pl.CostEstimate(
        flops=4 * B * N * C * hidden + 10 * B * N * C,      # 2 matmuls + SiLU/epilogue
        transcendentals=2 * B * N * hidden,                 # exp + approx reciprocal
        bytes_accessed=4 * (2 * B * N * C + 2 * C * hidden + hidden + C + (1 + B)),
    )

    out = pl.pallas_call(
        _make_kernel(compute_dtype),
        out_shape=jax.ShapeDtypeStruct((B, C, N), jnp.float32),
        grid_spec=grid_spec,
        compiler_params=pltpu.CompilerParams(
            dimension_semantics=("parallel", "parallel")),
        cost_estimate=cost,
    )(scalars, x, w1t, bias1, w2t, b2c)

    # (B, C, H*W) -> (B, C, H, W): free reshape, already NCHW.
    return out.reshape(B, C, H, W)


# ---- pure-JAX reference (same semantics as the PyTorch module) ------------------
def reference_forward(t, y_nchw, params):
    B, C, H, W = y_nchw.shape
    tn = -t
    beta = BETA_MIN + tn * (BETA_MAX - BETA_MIN)
    sqrt_beta = jnp.sqrt(beta)
    mean_dt, var_sqrt = white_noise(tn, B)
    var_sqrt = jnp.maximum(var_sqrt, 1e-5)

    f = -0.5 * beta * y_nchw
    g = jnp.broadcast_to(sqrt_beta, y_nchw.shape)
    f_mod = f * jnp.squeeze(var_sqrt) ** 2 + g * mean_dt[:, :, None, None] / WHITE_NOISE_DT
    g_mod = g * var_sqrt                                             # (1,1) broadcasts on (H,W)

    temb = time_embedding(tn, params)
    x = jnp.transpose(y_nchw, (0, 2, 3, 1)).reshape(B, H * W, C)
    h = jnp.dot(x, params["W1"], precision=jax.lax.Precision.HIGHEST) + params["b1"] + temb
    h = h * jax.nn.sigmoid(h)
    s = jnp.dot(h, params["W2"], precision=jax.lax.Precision.HIGHEST) + params["b2"]
    score = jnp.transpose(s.reshape(B, H, W, C), (0, 3, 1, 2))

    return -(f_mod - 0.5 * g_mod ** 2 * score)


def init_params(key, C, hidden):
    k1, k2, k3, k4, k5, k6 = jax.random.split(key, 6)
    s_in, s_h = 1.0 / np.sqrt(C), 1.0 / np.sqrt(hidden)
    return dict(
        W1=jax.random.normal(k1, (C, hidden), jnp.float32) * s_in,
        b1=jax.random.normal(k2, (hidden,), jnp.float32) * 0.01,
        W2=jax.random.normal(k3, (hidden, C), jnp.float32) * s_h,
        b2=jax.random.normal(k4, (C,), jnp.float32) * 0.01,
        Wt=jax.random.normal(k5, (hidden, hidden), jnp.float32) * s_h,
        bt=jax.random.normal(k6, (hidden,), jnp.float32) * 0.01,
    )


if __name__ == "__main__":
    key = jax.random.PRNGKey(0)
    kp, ky = jax.random.split(key)

    # NOTE: at this demo size (grid=(2,1)) the call is pure launch/step overhead;
    # tile_n / slot tuning must be re-benchmarked at production H*W.
    B, C, H, W, hidden = 2, 4, 16, 16, 32
    params = init_params(kp, C, hidden)
    y = jax.random.normal(ky, (B, C, H, W), jnp.float32)             # NCHW, like PyTorch
    t = jnp.asarray(-0.6, jnp.float32)   # reverse-time solver passes negated time; -t in [t0, t1]

    out = reverse_diffeq_forward(t, y, params)
    out = jax.block_until_ready(out)

    ref = reference_forward(t, y, params)
    ref_np = np.asarray(ref)
    scale = float(np.max(np.abs(ref_np)))

    # Tolerance documented: reference uses Precision.HIGHEST; kernel uses default MXU
    # precision + approx EUP reciprocal, and on v6e/v7x a bf16 SiLU intermediate whose
    # ~2^-8 rounding is amplified by coef = 0.5*beta*var^2 (~10 here).  Tolerances are
    # therefore expressed relative to the output scale.
    compute_dtype, _, _ = _chip_config()
    if compute_dtype == jnp.bfloat16:
        rtol, atol = 2e-2, 2e-2 * scale
    else:
        rtol, atol = 2e-3, 2e-3 * scale
    np.testing.assert_allclose(np.asarray(out), ref_np, rtol=rtol, atol=atol)

    print("KERNEL_OK")
</pallas_src>

<mosaic_0001>
module attributes {stable_mosaic.version = 11 : i64} {
  func.func @_reverse_drift_kernel(%arg0: i32, %arg1: i32, %arg2: memref<3xf32, #tpu.memory_space<smem>>, %arg3: memref<1x4x256xf32, #tpu.memory_space<vmem>>, %arg4: memref<32x4xf32, #tpu.memory_space<vmem>>, %arg5: memref<32x1xbf16, #tpu.memory_space<vmem>>, %arg6: memref<4x32xbf16, #tpu.memory_space<vmem>>, %arg7: memref<4x1xf32, #tpu.memory_space<vmem>>, %arg8: memref<1x4x256xf32, #tpu.memory_space<vmem>>) attributes {dimension_semantics = [#tpu.dimension_semantics<parallel>, #tpu.dimension_semantics<parallel>], iteration_bounds = array<i64: 2, 1>, scalar_prefetch = 1 : i64, scratch_operands = 0 : i64, tpu.core_type = #tpu.core_type<tc>, window_params = [{transform_indices = @transform_0, window_bounds = array<i64: 1, 4, 256>}, {pipeline_mode = #tpu.pipeline_mode<synchronous>, transform_indices = @transform_1, window_bounds = array<i64: 32, 4>}, {pipeline_mode = #tpu.pipeline_mode<synchronous>, transform_indices = @transform_2, window_bounds = array<i64: 32, 1>}, {pipeline_mode = #tpu.pipeline_mode<synchronous>, transform_indices = @transform_3, window_bounds = array<i64: 4, 32>}, {pipeline_mode = #tpu.pipeline_mode<synchronous>, transform_indices = @transform_4, window_bounds = array<i64: 4, 1>}, {transform_indices = @transform_5, window_bounds = array<i64: 1, 4, 256>}]} {
    %c0 = arith.constant 0 : index
    %c0_0 = arith.constant 0 : index
    %c0_1 = arith.constant 0 : index
    %0 = vector.load %arg3[%c0, %c0_0, %c0_1] : memref<1x4x256xf32, #tpu.memory_space<vmem>>, vector<1x4x256xf32>
    %1 = vector.shape_cast %0 : vector<1x4x256xf32> to vector<4x256xf32>
    %c0_2 = arith.constant 0 : index
    %c0_3 = arith.constant 0 : index
    %2 = vector.load %arg4[%c0_2, %c0_3] : memref<32x4xf32, #tpu.memory_space<vmem>>, vector<32x4xf32>
    %cst = arith.constant dense<0.000000e+00> : vector<32x256xf32>
    %3 = tpu.matmul %2, %1, %cst {dimension_numbers = #tpu.dot_dimension_numbers<[1], [0], [0], [1], [0, 0, 1, 1], [], []>} : vector<32x4xf32>, vector<4x256xf32>, vector<32x256xf32> -> vector<32x256xf32>
    %4 = arith.truncf %3 : vector<32x256xf32> to vector<32x256xbf16>
    %c0_4 = arith.constant 0 : index
    %c0_5 = arith.constant 0 : index
    %5 = vector.load %arg5[%c0_4, %c0_5] : memref<32x1xbf16, #tpu.memory_space<vmem>>, vector<32x1xbf16>
    %6 = vector.broadcast %5 : vector<32x1xbf16> to vector<32x256xbf16>
    %7 = arith.addf %4, %6 : vector<32x256xbf16>
    %cst_6 = arith.constant 0.000000e+00 : bf16
    %8 = vector.broadcast %cst_6 : bf16 to vector<32x256xbf16>
    %9 = arith.subf %8, %7 : vector<32x256xbf16>
    %10 = math.exp %9 : vector<32x256xbf16>
    %11 = arith.extf %10 : vector<32x256xbf16> to vector<32x256xf32>
    %cst_7 = arith.constant 1.000000e+00 : f32
    %12 = vector.broadcast %cst_7 : f32 to vector<32x256xf32>
    %13 = arith.addf %12, %11 : vector<32x256xf32>
    %14 = tpu.reciprocal %13 {approx = true} : vector<32x256xf32> -> vector<32x256xf32>
    %15 = arith.truncf %14 : vector<32x256xf32> to vector<32x256xbf16>
    %16 = arith.mulf %7, %15 : vector<32x256xbf16>
    %c0_8 = arith.constant 0 : index
    %c0_9 = arith.constant 0 : index
    %17 = vector.load %arg6[%c0_8, %c0_9] : memref<4x32xbf16, #tpu.memory_space<vmem>>, vector<4x32xbf16>
    %cst_10 = arith.constant dense<0.000000e+00> : vector<4x256xf32>
    %18 = tpu.matmul %17, %16, %cst_10 {dimension_numbers = #tpu.dot_dimension_numbers<[1], [0], [0], [1], [0, 0, 1, 1], [], []>} : vector<4x32xbf16>, vector<32x256xbf16>, vector<4x256xf32> -> vector<4x256xf32>
    %c0_11 = arith.constant 0 : index
    %c0_12 = arith.constant 0 : index
    %19 = vector.load %arg7[%c0_11, %c0_12] : memref<4x1xf32, #tpu.memory_space<vmem>>, vector<4x1xf32>
    %20 = vector.broadcast %19 : vector<4x1xf32> to vector<4x256xf32>
    %21 = arith.addf %18, %20 : vector<4x256xf32>
    %c0_13 = arith.constant 0 : index
    %22 = memref.load %arg2[%c0_13] : memref<3xf32, #tpu.memory_space<smem>>
    %c1_i32 = arith.constant 1 : i32
    %23 = arith.addi %c1_i32, %arg0 : i32
    %24 = arith.index_cast %23 : i32 to index
    %25 = memref.load %arg2[%24] : memref<3xf32, #tpu.memory_space<smem>>
    %26 = vector.broadcast %22 : f32 to vector<4x256xf32>
    %27 = arith.mulf %26, %1 : vector<4x256xf32>
    %28 = arith.addf %21, %27 : vector<4x256xf32>
    %29 = vector.broadcast %25 : f32 to vector<4x256xf32>
    %30 = arith.addf %28, %29 : vector<4x256xf32>
    %c0_14 = arith.constant 0 : index
    %c0_15 = arith.constant 0 : index
    %c0_16 = arith.constant 0 : index
    %31 = vector.load %arg8[%c0_14, %c0_15, %c0_16] : memref<1x4x256xf32, #tpu.memory_space<vmem>>, vector<1x4x256xf32>
    %32 = vector.shape_cast %31 : vector<1x4x256xf32> to vector<4x256xf32>
    %33 = vector.shape_cast %30 : vector<4x256xf32> to vector<1x4x256xf32>
    tpu.vector_store %arg8[%c0_14, %c0_15, %c0_16], %33 {strides = array<i32>} : memref<1x4x256xf32, #tpu.memory_space<vmem>>, vector<1x4x256xf32>,
    return
  }
  func.func @transform_0(%arg0: i32, %arg1: i32, %arg2: memref<3xf32, #tpu.memory_space<smem>>) -> (i32, i32, i32) {
    %c0_i32 = arith.constant 0 : i32
    %c0_i32_0 = arith.constant 0 : i32
    return %arg0, %c0_i32, %arg1 : i32, i32, i32
  }
  func.func @transform_1(%arg0: i32, %arg1: i32, %arg2: memref<3xf32, #tpu.memory_space<smem>>) -> (i32, i32) {
    %c0_i32 = arith.constant 0 : i32
    %c0_i32_0 = arith.constant 0 : i32
    %c0_i32_1 = arith.constant 0 : i32
    return %c0_i32, %c0_i32_0 : i32, i32
  }
  func.func @transform_2(%arg0: i32, %arg1: i32, %arg2: memref<3xf32, #tpu.memory_space<smem>>) -> (i32, i32) {
    %c0_i32 = arith.constant 0 : i32
    %c0_i32_0 = arith.constant 0 : i32
    %c0_i32_1 = arith.constant 0 : i32
    return %c0_i32, %c0_i32_0 : i32, i32
  }
  func.func @transform_3(%arg0: i32, %arg1: i32, %arg2: memref<3xf32, #tpu.memory_space<smem>>) -> (i32, i32) {
    %c0_i32 = arith.constant 0 : i32
    %c0_i32_0 = arith.constant 0 : i32
    %c0_i32_1 = arith.constant 0 : i32
    return %c0_i32, %c0_i32_0 : i32, i32
  }
  func.func @transform_4(%arg0: i32, %arg1: i32, %arg2: memref<3xf32, #tpu.memory_space<smem>>) -> (i32, i32) {
    %c0_i32 = arith.constant 0 : i32
    %c0_i32_0 = arith.constant 0 : i32
    %c0_i32_1 = arith.constant 0 : i32
    return %c0_i32, %c0_i32_0 : i32, i32
  }
  func.func @transform_5(%arg0: i32, %arg1: i32, %arg2: memref<3xf32, #tpu.memory_space<smem>>) -> (i32, i32, i32) {
    %c0_i32 = arith.constant 0 : i32
    %c0_i32_0 = arith.constant 0 : i32
    return %arg0, %c0_i32, %arg1 : i32, i32, i32
  }
}

</mosaic_0001>

<bundles_post_ra>
// kernel: tpu_custom_call.1
= control target key start
LH: loop header
LB: loop body
LE: loop exit
PB: predicated region body
PF: predicated region fallthrough
CT: control target
= control target key end

     0   :  { %s1055_s0 = inlined_call_operand.vmem [shape: f32[3], index: 0, kind: input, shape index: {}]   ;;  %s1056_s1 = inlined_call_operand.vmem [shape: f32[2,4,256], index: 1, kind: input, shape index: {}]   ;;  %s1057_s2 = inlined_call_operand.vmem [shape: f32[32,4], index: 2, kind: input, shape index: {}]   ;;  %s1058_s3 = inlined_call_operand.vmem [shape: bf16[32,1], index: 3, kind: input, shape index: {}]   ;;  %s1059_s4 = inlined_call_operand.vmem [shape: bf16[4,32], index: 4, kind: input, shape index: {}]   ;;  %s1060_s5 = inlined_call_operand.vmem [shape: f32[4,1], index: 5, kind: input, shape index: {}]   ;;  %s1061_s6 = inlined_call_operand.hbm [shape: f32[2,4,256], index: 6, kind: output, shape index: {}]  }
   0x1   :  { %s11_s23 = sshll.u32 %s1055_s0, 4  ;;  %s12_s23 = int_to_ptr.vmem [resolvable:$true] %s11_s23 }
   0x2   :  { %s769_s24 = scalar_lea.vmem %s12_s23, 16  ;;  %p774_p1 = scmp.lt.s32.totalorder %s12_s23, %s12_s23 }
   0x3   :  { %p770_p0 = scmp.ne.s32.totalorder %s12_s23, %s769_s24  ;;  %p775_p2 = scmp.lt.s32.totalorder %s769_s24, %s769_s24 }
   0x5   :  { %p776_p3 = por %p775_p2, %p774_p1 }
   0x7   :  { %p777_p4 = pnand %p776_p3, %p770_p0 }
   0x9   :  { %780 = shalt.err (!%p777_p4)  }
   0xa   :  { %s863_s25 = smov [#allocation3]  }
   0xb   :  { %14 = dma.vmem_to_smem %s12_s23, 16, %s863_s25, [#allocation2] }
   0xc   :  { %833 = dma.done.wait [#allocation2], 16 }
   0xd   :  { %834 = vsyncadd [#allocation2], 4294967280 }
   0xe   :  { %16 = sfence }
   0xf   :  { %17 = vsyncpa [#allocation5], 0 }
  0x10   :  { %19 = vsyncpa [#allocation5 + $0x1], 0  ;;  %s906_s26 = smov 0   ;;  %s908_s27 = smov 0  }
  0x11   :  { %s910_s0 = smov 0   ;;  %s912_s28 = smov 0  }
  0x12   :  { %s914_s29 = smov 0   ;;  %s916_s30 = smov 0  }
  0x13 LB: > { %s659_s7 = sadd.s32 4294967295, %s861_s30   ;;  %s660_s8 = sadd.s32 4294967294, %s861_s30   ;;  %s861_s30 = sphi %s916_s30, %s25_s30   ;;  %s857_s29 = sphi %s914_s29, %s1068_s29   ;;  %s853_s28 = sphi %s912_s28, %s1067_s28   ;;  %s849_s0 = sphi %s910_s0, %s1066_s0   ;;  %s845_s27 = sphi %s908_s27, %s1065_s27   ;;  %s841_s26 = sphi %s906_s26, %s1064_s26  }
  0x14   : > { %s37_s9 = sadd.s32 1, %s857_s29  ;;  %s158_s10 = sadd.s32 1, %s849_s0 }
  0x15   : > { %p39_p5 = scmp.ge.s32.totalorder %s37_s9, 2  ;;  %p168_p6 = scmp.ne.s32.totalorder %s849_s0, %s845_s27 }
  0x16   : > { %p169_p7 = scmp.eq.s32.totalorder %s659_s7, 1  ;;  %p174_p8 = scmp.ne.s32.totalorder %s845_s27, %s841_s26 }
  0x17   : > { %s1070_s9 = smov (%p39_p5, %s37_s9), 0  ;;  %p175_p10 = scmp.eq.s32.totalorder %s660_s8, 1 }
  0x18   : > { %p946_p9 = por %p169_p7, %p168_p6  ;;  %s153_s12 = ssub.s32 %s857_s29, %s1070_s9 }
  0x19   : > { %p663_p11 = scmp.ge.s32.totalorder %s861_s30, 1  ;;  %p156_p12 = scmp.eq.s32.totalorder %s153_s12, 0 }
  0x1a   : > { %p953_p13 = por %p175_p10, %p174_p8  ;;  %p218_p0 = scmp.lt.s32.totalorder %s861_s30, 3 }
  0x1b   : > { %s959_s14 = scalar_select %p156_p12, %s849_s0, %s158_s10  }
  0x1c   : > { %p219_p1 = pnand %p663_p11, %p218_p0 }
  0x1d   : > { %p251_p2 = scmp.lt.s32.totalorder (!%p219_p1), %s853_s28, 1  ;;  %v864_v0 = vmov (!%p219_p1), 0.0   ;;  %v380_v1 = vld [vmem:[%s1058_s3] sm:$0xf] (!%p219_p1)  ;;  %v865_v2 = vmov (!%p219_p1), 0   ;;  %vm282_vm0 = vcmask (!%p219_p1), 1043456   ;;  %v392_v15 = vlaneseq (!%p219_p1) }
  0x1e   : > { %222 = sbr.rel (%p219_p1) target bundleno = 550 (0x226), region = 40  ;;  %351 = vmatprep.mubr.f32.mxu0 (!%p219_p1), %v864_v0  ;;  %742 = vset.pattern.permute.xlu0 (!%p219_p1), %v865_v2  ;;  %v382_v3 = vld [vmem:[%s1058_s3 + $0x8] sm:$0xf] (!%p219_p1)  ;;  %v381_v4 = vld [vmem:[%s1058_s3 + $0x4] sm:$0xf] (!%p219_p1)  ;;  %vm269_vm1 = vcmask (!%p219_p1), 31744  }
  0x1f   : > { %743 = vset.pattern.permute.xlu1 (!%p219_p1), %v865_v2  ;;  %386 = vperm.xlu0 (!%p219_p1), %742, %v380_v1   ;;  %v383_v5 = vld [vmem:[%s1058_s3 + $0xc] sm:$0xf] (!%p219_p1)  ;;  %v263_v8 = vld [vmem:[%s1057_s2] sm:$0xff] (!%p219_p1)  ;;  %v265_v11 = vld [vmem:[%s1057_s2 + $0x10] sm:$0xff] (!%p219_p1)  ;;  %v866_v13 = vmov (!%p219_p1), 839922192  }
  0x20   : > { %410 = vperm.xlu1 (!%p219_p1), %743, %v382_v3   ;;  %539 = vmatprep.mubr.bf16.mxu1 (!%p219_p1), %v865_v2  ;;  %v497_v9 = vld [vmem:[%s1060_s5] sm:$0xf] (!%p219_p1)  ;;  %v264_v10 = vld [vmem:[%s1057_s2 + $0x8] sm:$0xff] (!%p219_p1)  ;;  %v266_v12 = vld [vmem:[%s1057_s2 + $0x18] sm:$0xff] (!%p219_p1)  ;;  %v390_v14 = vunpack.c.l.s4 (!%p219_p1), %v866_v13  ;;  %v393_v17 = vshrl.u32 (!%p219_p1), %v392_v15, 7  ;;  %vm503_vm2 = vcmask (!%p219_p1), 261120  }
  0x21   : > { %s548_s25 = sld [smem:[#allocation3]] (!%p219_p1)  ;;  %s549_s7 = sadd.s32 (!%p219_p1), 1, %s853_s28 }
  0x22   : > { %v391_v16 = vunpack.c.0.s8 (!%p219_p1), %v390_v14  ;;  %s247_s10 = sand.u32 (!%p219_p1), 1, %s845_s27   ;;  %s682_s15 = sshll.u32 (!%p219_p1), %s853_s28, 7 }
  0x23   : > { %398 = vperm.xlu0 (!%p219_p1), %742, %v381_v4   ;;  %s664_s12 = sshll.u32 (!%p219_p1), %s247_s10, 3  ;;  %s567_s21 = scalar_lea.sflag (!%p219_p1), [#allocation5], %s247_s10 }
  0x24   : > { %422 = vperm.xlu1 (!%p219_p1), %743, %v383_v5   ;;  %v394_v19 = vsub.s32 (!%p219_p1), %v391_v16, %v393_v17  ;;  %s249_s16 = scalar_lea.vmem (!%p219_p1), [#allocation4], %s664_s12 }
  0x25   : > { %s252_s17 = scalar_select %p251_p2, %s853_s28, 1 }
  0x26   : > { %s867_s28 = smov [#allocation4]  }
  0x27   : > { %s681_s20 = sshll.u32 %s252_s17, 3  ;;  %500 = vperm.xlu0 %742, %v497_v9   ;;  %s583_s17 = sshll.u32 %s249_s16, 4  ;;  %s1010_s17 = int_to_ptr.vmem [resolvable:$true] %s583_s17 }
  0x28   : > { %s258_s8 = scalar_lea.vmem %s1056_s1, %s681_s20  ;;  %s1008_s20 = scalar_lea.hbm %s1061_s6, %s682_s15 }
  0x29   : > { %v978_v6 = vld [vmem:[%s258_s8] sm:$0xff]  ;;  %s550_s8 = sld [smem:[#allocation3 + %s549_s7]]  ;;  %s781_s22 = scalar_lea.vmem %s1010_s17, 128 }
  0x2a   : > { %v268_v7 = vcombine.high %v978_v6, %v978_v6  ;;  %p782_p3 = scmp.ne.s32.totalorder %s1010_s17, %s781_s22  ;;  %s785_s23 = sshll.u32 %s867_s28, 4  ;;  %s786_s23 = int_to_ptr.vmem [resolvable:$false] %s785_s23 }
  0x2b   : > { %s787_s24 = scalar_lea.vmem %s786_s23, 256  ;;  %p788_p6 = scmp.lt.s32.totalorder %s1010_s17, %s786_s23 }
  0x2c   : > { %667 = vmatprep.subr.msk.mxu0 %vm282_vm0, %v268_v7  ;;  %p783_p4 = pnand %p782_p3, %p946_p9  ;;  %p789_p7 = scmp.lt.s32.totalorder %s787_s24, %s781_s22 }
  0x2d   : > { %668 = vmatpush1.msk.msra.mxu0 %vm282_vm0, %v978_v6 }
  0x2e   : > { %669 = vmatmul.mubr.msk.f32.vlgmr.msra.gmra.mrb[0].mxu0 %vm269_vm1, %v263_v8  ;;  %p784_p5 = pneg %p783_p4  ;;  %p790_p8 = por %p789_p7, %p788_p6 }
  0x2f   : > { %357 = vmatprep.mubr.f32.mxu0 %v864_v0 }
  0x30   : > { %p791_p10 = pnand %p790_p8, %p784_p5 }
  0x32   : > { %670 = vmatmul.mubr.msk.f32.gmra.mrb[2].mxu0 %vm269_vm1, %v264_v10 }
  0x33   : > { %363 = vmatprep.mubr.f32.mxu0 %v864_v0 }
  0x36   : > { %671 = vmatmul.mubr.msk.f32.gmra.mrb[4].mxu0 %vm269_vm1, %v265_v11 }
  0x37   : > { %369 = vmatprep.mubr.f32.mxu0 %v864_v0 }
  0x3a   : > { %672 = vmatmul.mubr.msk.f32.gmra.mrb[6].mxu0 %vm269_vm1, %v266_v12 }
  0x9e   : > { %v387_v18 = vpop.permute.xlu0 %386 }
  0x9f   : > { %v395_v21 = vrot.slane %v387_v18, %v394_v19  ;;  %v411_v24 = vpop.permute.xlu1 %410 }
  0xa0   : > { %v419_v35 = vrot.slane %v411_v24, %v394_v19 }
  0xa2   : > { %v399_v20 = vpop.permute.xlu0 %398 }
  0xa3   : > { %v407_v22 = vrot.slane %v399_v20, %v394_v19  ;;  %v423_v31 = vpop.permute.xlu1 %422 }
  0xa4   : > { %v431_v37 = vrot.slane %v423_v31, %v394_v19 }
  0xa5   : > { %v673_v26 = vcombine.low %v395_v21, %v407_v22 }
  0xa6   : > { %v674_v43 = vcombine.low %v419_v35, %v431_v37 }
 0x101   : > { %v353_v23 = vpop.f32.mrb[0].mxu0 }
 0x102   : > { %v355_v25 = vpop.f32.mrb[1].mxu0 }
 0x105   : > { %v359_v27 = vpop.f32.mrb[2].mxu0 }
 0x106   : > { %v376_v28 = vpack.c.bf16 %v359_v27, %v353_v23  ;;  %v361_v29 = vpop.f32.mrb[3].mxu0  ;;  %v551_v27 = vstv %s548_s25 }
 0x107   : > { %v377_v30 = vpack.c.bf16 %v361_v29, %v355_v25  ;;  %v501_v29 = vpop.permute.xlu0 %500 }
 0x108   : > { %v444_v32 = vadd.bf16 %v673_v26, %v376_v28  ;;  %v552_v28 = vmul.f32 %v551_v27, %v978_v6 }
 0x109   : > { %v365_v33 = vpop.f32.mrb[4].mxu0  ;;  %v445_v34 = vadd.bf16 %v673_v26, %v377_v30  ;;  %v496_v26 = vld [vmem:[%s1059_s4] sm:$0x3] }
 0x10a   : > { %v448_v36 = vsub.bf16 0, %v444_v32  ;;  %v367_v38 = vpop.f32.mrb[5].mxu0  ;;  %v554_v31 = vcombine.high %v552_v28, %v552_v28 }
 0x10b   : > { %v449_v39 = vsub.bf16 0, %v445_v34 }
 0x10c   : > { %v453_v40 = vmul.bf16 1069105081, %v448_v36 }
 0x10d   : > { %v371_v41 = vpop.f32.mrb[6].mxu0  ;;  %v456_v42 = vmul.bf16 1069105081, %v449_v39 }
 0x10e   : > { %745 = vpow.bf16 %v453_v40  ;;  %v378_v44 = vpack.c.bf16 %v371_v41, %v365_v33  ;;  %v373_v45 = vpop.f32.mrb[7].mxu0 }
 0x10f   : > { %v379_v46 = vpack.c.bf16 %v373_v45, %v367_v38  ;;  %747 = vpow.bf16 %v456_v42 }
 0x110   : > { %v446_v47 = vadd.bf16 %v674_v43, %v378_v44 }
 0x111   : > { %v447_v48 = vadd.bf16 %v674_v43, %v379_v46 }
 0x112   : > { %v450_v49 = vsub.bf16 0, %v446_v47 }
 0x113   : > { %v451_v50 = vsub.bf16 0, %v447_v48 }
 0x114   : > { %v459_v51 = vmul.bf16 1069105081, %v450_v49 }
 0x115   : > { %v462_v52 = vmul.bf16 1069105081, %v451_v50 }
 0x116   : > { %749 = vpow.bf16 %v459_v51 }
 0x117   : > { %751 = vpow.bf16 %v462_v52 }
 0x119   : > { %v746_v53 = vpop.eup %745 }
 0x11a   : > { %v748_v54 = vpop.eup %747  ;;  %v464_v55 = vunpack.c.l.bf16 %v746_v53  ;;  %v466_v56 = vunpack.c.h.bf16 %v746_v53 }
 0x11b   : > { %v465_v57 = vunpack.c.l.bf16 %v748_v54  ;;  %v467_v58 = vunpack.c.h.bf16 %v748_v54 }
 0x11c   : > { %v472_v59 = vadd.f32 1.0, %v464_v55  ;;  %v474_v62 = vadd.f32 1.0, %v466_v56 }
 0x11d   : > { %v473_v60 = vadd.f32 1.0, %v465_v57  ;;  %v475_v61 = vadd.f32 1.0, %v467_v58 }
 0x11e   : > { %753 = vrcp.f32 %v472_v59 }
 0x11f   : > { %755 = vrcp.f32 %v473_v60 }
 0x120   : > { %757 = vrcp.f32 %v475_v61 }
 0x121   : > { %v750_v63 = vpop.eup %749  ;;  %759 = vrcp.f32 %v474_v62 }
 0x122   : > { %v752_v0 = vpop.eup %751  ;;  %v468_v1 = vunpack.c.l.bf16 %v750_v63  ;;  %v470_v2 = vunpack.c.h.bf16 %v750_v63 }
 0x123   : > { %v469_v3 = vunpack.c.l.bf16 %v752_v0  ;;  %v471_v4 = vunpack.c.h.bf16 %v752_v0 }
 0x124   : > { %v476_v5 = vadd.f32 1.0, %v468_v1  ;;  %v478_v9 = vadd.f32 1.0, %v470_v2 }
 0x125   : > { %v477_v7 = vadd.f32 1.0, %v469_v3  ;;  %v479_v8 = vadd.f32 1.0, %v471_v4 }
 0x126   : > { %761 = vrcp.f32 %v476_v5 }
 0x127   : > { %763 = vrcp.f32 %v477_v7 }
 0x128   : > { %v754_v10 = vpop.eup %753  ;;  %765 = vrcp.f32 %v479_v8 }
 0x129   : > { %v756_v11 = vpop.eup %755  ;;  %767 = vrcp.f32 %v478_v9 }
 0x12a   : > { %v758_v12 = vpop.eup %757 }
 0x12b   : > { %v760_v13 = vpop.eup %759  ;;  %v489_v14 = vpack.c.bf16 %v758_v12, %v756_v11 }
 0x12c   : > { %v488_v15 = vpack.c.bf16 %v760_v13, %v754_v10 }
 0x12d   : > { %v493_v16 = vmul.bf16 %v489_v14, %v445_v34  ;;  %v558_v34 = vstv %s550_s8 }
 0x12e   : > { %v492_v17 = vmul.bf16 %v488_v15, %v444_v32 }
 0x12f   : > { %507 = vmatprep.subr.bf16.mxu1 %v493_v16 }
 0x130   : > { %v762_v18 = vpop.eup %761  ;;  %508 = vmatpush1.bf16.msra.mxu1 %v492_v17 }
 0x131   : > { %v764_v19 = vpop.eup %763 }
 0x132   : > { %v766_v20 = vpop.eup %765 }
 0x133   : > { %v768_v21 = vpop.eup %767  ;;  %v491_v22 = vpack.c.bf16 %v766_v20, %v764_v19 }
 0x134   : > { %v490_v23 = vpack.c.bf16 %v768_v21, %v762_v18 }
 0x135   : > { %v495_v24 = vmul.bf16 %v491_v22, %v447_v48 }
 0x136   : > { %v494_v25 = vmul.bf16 %v490_v23, %v446_v47 }
 0x137   : > { %509 = vmatprep.subr.bf16.mxu1 %v495_v24 }
 0x138   : > { %510 = vmatpush1.bf16.msra.mxu1 %v494_v25 }
 0x13b   : > { %675 = vmatmul.mubr.msk.bf16.vlgmr.msra.gmra.mrb[0].mxu1 %vm503_vm2, %v496_v26 }
 0x20e   : > { %v541_v30 = vpop.f32.mrb[0].mxu1 }
 0x20f   : > { %v542_v32 = vadd.f32 %v541_v30, %v501_v29  ;;  %v543_v33 = vpop.f32.mrb[1].mxu1 }
 0x210   : > { %v544_v35 = vadd.f32 %v543_v33, %v501_v29  ;;  %v545_v36 = vpop.f32.mrb[2].mxu1 }
 0x211   : > { %v556_v37 = vadd.f32 %v552_v28, %v542_v32  ;;  %v546_v38 = vpop.f32.mrb[3].mxu1 }
 0x212   : > { %v557_v39 = vadd.f32 %v554_v31, %v544_v35 }
 0x213   : > { %v559_v40 = vadd.f32 %v558_v34, %v556_v37 }
 0x214   : > { %v560_v41 = vadd.f32 %v558_v34, %v557_v39 }
 0x216   : > { %v563_v6 = vcombine.low %v559_v40, %v560_v41 }
 0x218   : > { %565 = vst [vmem:[%s249_s16] sm:$0xff] %v563_v6 }
 0x219   : > { %794 = shalt.err (!%p791_p10)
}
 0x21a   : > { %s795_s25 = scalar_lea.hbm %s1008_s20, 128  ;;  %s799_s10 = scalar_lea.hbm %s1061_s6, 256 }
 0x21b   : > { %p796_p11 = scmp.ne.s32.totalorder %s1008_s20, %s795_s25  ;;  %p800_p1 = scmp.lt.u32.totalorder %s1008_s20, %s1061_s6 }
 0x21c   : > { %p801_p2 = scmp.lt.u32.totalorder %s799_s10, %s795_s25  ;;  %p803_p4 = scmp.lt.u32.totalorder %s795_s25, %s1008_s20 }
 0x21d   : > { %p797_p12 = pnand %p796_p11, %p946_p9 }
 0x21e   : > { %p802_p3 = por %p801_p2, %p800_p1 }
 0x21f   : > { %p798_p0 = pneg %p797_p12 }
 0x220   : > { %p804_p5 = por %p803_p4, %p802_p3 }
 0x222   : > { %p805_p6 = pnand %p804_p5, %p798_p0 }
 0x224   : > { %808 = shalt.err (!%p805_p6)
}
 0x225   : > { %683 = dma.vmem_to_hbm [thread:$0]  (%p946_p9), %s1010_s17, 128, %s1008_s20, %s567_s21  }
 0x226 PF: > { %p689_p7 = scmp.ge.s32.totalorder %s861_s30, 2  ;;  %s595_s16 = sand.u32 1, %s841_s26  }
 0x227   : > { %s596_s18 = scalar_lea.sflag [#allocation5], %s595_s16 }
 0x228   : > { %p686_p8 = pnand %p689_p7, %p953_p13 }
 0x22a   : > { %836 = dma.done.wait (!%p686_p8), %s596_s18, 128  }
 0x22b   : > { %838 = vsyncadd (!%p686_p8), %s596_s18, 4294967168  ;;  %s25_s30 = sadd.s32 1, %s861_s30   ;;  %s1064_s26 = smov %s845_s27 }
 0x22c   : > { %p22_p10 = scmp.ge.s32.totalorder %s25_s30, 4   ;;  %s1065_s27 = smov %s849_s0 }
 0x22d   : > { %s1066_s0 = smov %s959_s14  ;;  %s1067_s28 = smov %s857_s29 }
 0x22e   : > { %s1068_s29 = smov %s1070_s9  ;;  %24 = sbr.rel (!%p22_p10) target bundleno = 19 (0x13), region = 75 }
 0x235   :  { %601 = vsyncpa [#allocation5], 1 }
 0x236   :  { %603 = vsyncpa [#allocation5 + $0x1], 1 }

</bundles_post_ra>
